<compile_context>
chip_gen: v7x
topology: tpu7x:2x2x1
jax: 0.10.0
libtpu: 0.0.40
codegen_flags: <defaults>
</compile_context>

<pallas_src>
import jax
import jax.numpy as jnp
from jax import lax
from jax.experimental import pallas as pl
from jax.experimental.pallas import tpu as pltpu


def mlp_kernel(x_ref, params_ref, b2_ref, o_ref):
    # x_ref:      (B, V+1)  -- last column is ones (bias fold)
    # params_ref: (V+2, H)  -- rows [0:V] = w1, row V = b1, row V+1 = w2 row
    # b2_ref:     (1,) scalar in SMEM
    # o_ref:      (1, B)    -- lane-dense output row
    k_aug = x_ref.shape[1]                     # V + 1 (static)

    x = x_ref[...]                             # (B, V+1)
    w1_aug = params_ref[:k_aug, :]             # (V+1, H), includes bias row
    w2_row = params_ref[k_aug:, :]             # (1, H)

    # linear1 + bias (folded) on the MXU, ReLU on the VPU.
    h = jnp.dot(x, w1_aug, preferred_element_type=jnp.float32)   # (B, H)
    h = jnp.maximum(h, 0.0)

    # linear3 (out_features == 1): contract over H, producing a lane-dense
    # (1, B) row directly (no 1-lane masked store).
    y = lax.dot_general(
        w2_row, h,
        dimension_numbers=(((1,), (1,)), ((), ())),
        preferred_element_type=jnp.float32,
    ) + b2_ref[0]                                                # (1, B)

    # sigmoid via a single EUP transcendental (exact, no overflow path).
    o_ref[...] = (0.5 * (jnp.tanh(0.5 * y) + 1.0)).astype(o_ref.dtype)


def mlp_forward(x, w1, b1, w2_row, b2):
    """x: [B, V]; w1: [V, H]; b1: [1, H]; w2_row: [1, H]; b2: [1] -> [B, 1]."""
    B, V = x.shape
    H = w1.shape[1]

    # Host-side prep (one-time, cheap): fold b1 into w1 and pack everything
    # into a single VMEM slab; augment x with a ones column.
    x_aug = jnp.concatenate([x, jnp.ones((B, 1), x.dtype)], axis=1)      # (B, V+1)
    params = jnp.concatenate(
        [w1, b1.reshape(1, H), w2_row.reshape(1, H)], axis=0)           # (V+2, H)

    out_row = pl.pallas_call(
        mlp_kernel,
        out_shape=jax.ShapeDtypeStruct((1, B), x.dtype),
        in_specs=[
            pl.BlockSpec(memory_space=pltpu.MemorySpace.VMEM),   # x_aug
            pl.BlockSpec(memory_space=pltpu.MemorySpace.VMEM),   # packed params
            pl.BlockSpec(memory_space=pltpu.MemorySpace.SMEM),   # b2 scalar
        ],
        out_specs=pl.BlockSpec(memory_space=pltpu.MemorySpace.VMEM),
    )(x_aug, params, b2)

    return out_row.T                                              # (B, 1)


if __name__ == "__main__":
    vocab_size = 32
    n_hidden = 32
    batch = 8

    key = jax.random.PRNGKey(0)
    kx, k1, k2, k3, k4 = jax.random.split(key, 5)

    # Deterministic parameter init (uniform like PyTorch's default Linear init).
    bound1 = 1.0 / (vocab_size ** 0.5)
    w1 = jax.random.uniform(k1, (vocab_size, n_hidden), jnp.float32, -bound1, bound1)
    b1 = jax.random.uniform(k2, (1, n_hidden), jnp.float32, -bound1, bound1)
    bound2 = 1.0 / (n_hidden ** 0.5)
    # Second-layer weight kept as a lane-dense row (1, H); bias is a scalar.
    w2_row = jax.random.uniform(k3, (1, n_hidden), jnp.float32, -bound2, bound2)
    b2 = jax.random.uniform(k4, (1,), jnp.float32, -bound2, bound2)

    x = jax.random.normal(kx, (batch, vocab_size), jnp.float32)

    out = mlp_forward(x, w1, b1, w2_row, b2)
    jax.block_until_ready(out)

    # Reference check in plain JAX (same math as the PyTorch module forward),
    # built from the ORIGINAL (unpacked) parameters.
    ref = jax.nn.sigmoid(jnp.maximum(x @ w1 + b1, 0.0) @ w2_row.T + b2)
    assert out.shape == (batch, 1)
    assert jnp.allclose(out, ref, atol=1e-4, rtol=1e-4), "mismatch vs reference"

    print("KERNEL_OK")
</pallas_src>

<mosaic_0001>
module attributes {stable_mosaic.version = 11 : i64} {
  func.func @mlp_kernel(%arg0: memref<8x33xf32, #tpu.memory_space<vmem>>, %arg1: memref<34x32xf32, #tpu.memory_space<vmem>>, %arg2: memref<1xf32, #tpu.memory_space<smem>>, %arg3: memref<1x8xf32, #tpu.memory_space<vmem>>) attributes {dimension_semantics = [], scalar_prefetch = 0 : i64, scratch_operands = 0 : i64, tpu.core_type = #tpu.core_type<tc>} {
    %c0 = arith.constant 0 : index
    %c0_0 = arith.constant 0 : index
    %0 = vector.load %arg0[%c0, %c0_0] : memref<8x33xf32, #tpu.memory_space<vmem>>, vector<8x33xf32>
    %c0_1 = arith.constant 0 : index
    %c0_2 = arith.constant 0 : index
    %1 = vector.load %arg1[%c0_1, %c0_2] : memref<34x32xf32, #tpu.memory_space<vmem>>, vector<33x32xf32>
    %c33 = arith.constant 33 : index
    %c0_3 = arith.constant 0 : index
    %2 = vector.load %arg1[%c33, %c0_3] : memref<34x32xf32, #tpu.memory_space<vmem>>, vector<1x32xf32>
    %cst = arith.constant dense<0.000000e+00> : vector<8x32xf32>
    %3 = tpu.matmul %0, %1, %cst {dimension_numbers = #tpu.dot_dimension_numbers<[1], [0], [0], [1], [0, 0, 1, 1], [], []>} : vector<8x33xf32>, vector<33x32xf32>, vector<8x32xf32> -> vector<8x32xf32>
    %cst_4 = arith.constant 0.000000e+00 : f32
    %4 = vector.broadcast %cst_4 : f32 to vector<8x32xf32>
    %5 = arith.maximumf %3, %4 : vector<8x32xf32>
    %cst_5 = arith.constant dense<0.000000e+00> : vector<1x8xf32>
    %6 = tpu.matmul %2, %5, %cst_5 {dimension_numbers = #tpu.dot_dimension_numbers<[1], [1], [0], [0], [0, 0, 1, 0], [], []>} : vector<1x32xf32>, vector<8x32xf32>, vector<1x8xf32> -> vector<1x8xf32>
    %c0_6 = arith.constant 0 : index
    %7 = memref.load %arg2[%c0_6] : memref<1xf32, #tpu.memory_space<smem>>
    %8 = vector.broadcast %7 : f32 to vector<1x8xf32>
    %9 = arith.addf %6, %8 : vector<1x8xf32>
    %cst_7 = arith.constant 5.000000e-01 : f32
    %10 = vector.broadcast %cst_7 : f32 to vector<1x8xf32>
    %11 = arith.mulf %10, %9 : vector<1x8xf32>
    %12 = math.tanh %11 : vector<1x8xf32>
    %cst_8 = arith.constant 1.000000e+00 : f32
    %13 = vector.broadcast %cst_8 : f32 to vector<1x8xf32>
    %14 = arith.addf %12, %13 : vector<1x8xf32>
    %cst_9 = arith.constant 5.000000e-01 : f32
    %15 = vector.broadcast %cst_9 : f32 to vector<1x8xf32>
    %16 = arith.mulf %15, %14 : vector<1x8xf32>
    %c0_10 = arith.constant 0 : index
    %c0_11 = arith.constant 0 : index
    %17 = vector.load %arg3[%c0_10, %c0_11] : memref<1x8xf32, #tpu.memory_space<vmem>>, vector<1x8xf32>
    tpu.vector_store %arg3[%c0_10, %c0_11], %16 {strides = array<i32>} : memref<1x8xf32, #tpu.memory_space<vmem>>, vector<1x8xf32>,
    return
  }
}

</mosaic_0001>

<bundles_post_ra>
// kernel: tpu_custom_call.1
= control target key start
LH: loop header
LB: loop body
LE: loop exit
PB: predicated region body
PF: predicated region fallthrough
CT: control target
= control target key end

     0   :  { %v267_v3 = vmov 0.0|0.0   ;;  %v268_v6 = vmov 0.0   ;;  %vm269_vm0 = vmmov 0   ;;  %s327_s0 = inlined_call_operand.vmem [shape: f32[8,33], index: 0, kind: input, shape index: {}]   ;;  %s328_s1 = inlined_call_operand.vmem [shape: f32[34,32], index: 1, kind: input, shape index: {}]   ;;  %s329_s2 = inlined_call_operand.<no memory space> [shape: f32[1], index: 2, kind: input, shape index: {}]   ;;  %s330_s3 = inlined_call_operand.hbm [shape: f32[1,8], index: 3, kind: output, shape index: {}]  }
   0x1   :  { %v17_v0 = vld [vmem:[%s328_s1] sm:$0xff]  ;;  %v18_v1 = vld [vmem:[%s328_s1 + $0x8] sm:$0xff]  ;;  %v19_v2 = vld [vmem:[%s328_s1 + $0x10] sm:$0xff]  ;;  %231 = vmatprep.subr.bf16.mxu0 %v267_v3  ;;  %226 = vmatprep.subr.mxu1 %v268_v6 }
   0x2   :  { %v232_v4 = vpack.c.bf16 %v18_v1, %v17_v0  ;;  %v20_v5 = vld [vmem:[%s328_s1 + $0x18] sm:$0xff]  ;;  %223 = vmatprep.mubr.msk.f32.mxu0 %vm269_vm0, %v268_v6  ;;  %228 = vmatprep.mubr.msk.f32.mxu1 %vm269_vm0, %v268_v6 }
   0x3   :  { %9 = vsyncpa [#allocation4], 0  ;;  %v235_v7 = vpack.c.bf16 %v20_v5, %v19_v2  ;;  %v21_v8 = vld [vmem:[%s328_s1 + $0x20] sm:$0x1]  ;;  %vm27_vm1 = vcmask 1040384   ;;  %vm23_vm2 = vcmask 269312   ;;  %v103_v14 = vstv %s329_s2 }
   0x4   :  { %233 = vmatpush3.bf16.msra.mxu0 %v232_v4  ;;  %v16_v9 = vld [vmem:[%s327_s0] sm:$0xff]  ;;  %vm104_vm3 = vcmask 261120   ;;  %s270_s0 = smov [#allocation3]   ;;  %vm185_vm4 = vcmask 57344  }
   0x5   :  { %234 = vmatprep.subr.bf16.mxu0 %v267_v3  ;;  %v22_v13 = vld [vmem:[%s328_s1 + $0x21] sm:$0x1]  ;;  %s193_s28 = sshll.u32 %s270_s0, 4  ;;  %s194_s28 = int_to_ptr.vmem [resolvable:$true] %s193_s28 }
   0x6   :  { %s243_s29 = scalar_lea.vmem %s194_s28, 16  ;;  %s247_s1 = scalar_lea.vmem %s194_s28, 32 }
   0x7   :  { %p244_p0 = scmp.ne.s32.totalorder %s194_s28, %s243_s29  ;;  %p248_p1 = scmp.lt.s32.totalorder %s194_s28, %s194_s28 }
   0x8   :  { %236 = vmatpush3.bf16.msra.mxu0 %v235_v7  ;;  %p249_p2 = scmp.lt.s32.totalorder %s247_s1, %s243_s29 }
   0x9   :  { %221 = vmatprep.subr.mxu0 %v268_v6 }
   0xa   :  { %p250_p3 = por %p249_p2, %p248_p1 }
   0xc   :  { %222 = vmatpush3.msk.msra.mxu0 %vm27_vm1, %v21_v8  ;;  %p251_p4 = pnand %p250_p3, %p244_p0 }
   0xd   :  { %224 = vmatmul.mubr.msk.f32.vlgmr.msra.gmra.mrb[0].mxu0 %vm23_vm2, %v16_v9 }
  0xe0   :  { %v97_v10 = vpop.f32.mrb[0].mxu0 }
  0xe1   :  { %v101_v11 = vmax.f32 %v97_v10, 0.0  ;;  %v225_v12 = vpop.f32.mrb[1].mxu0 }
  0xe3   :  { %227 = vmatpush3.xpose.msk.msra.mxu1 %vm104_vm3, %v101_v11 }
  0xe6   :  { %229 = vmatmul.mubr.msk.f32.vlgmr.msra.gmra.mrb[0].mxu1 %vm104_vm3, %v22_v13 }
 0x1b9   :  { %v177_v15 = vpop.f32.mrb[0].mxu1 }
 0x1ba   :  { %v178_v16 = vadd.f32 %v177_v15, %v103_v14  ;;  %v230_v17 = vpop.f32.mrb[1].mxu1 }
 0x1bc   :  { %v181_v18 = vmul.f32 0.5, %v178_v16 }
 0x1be   :  { %241 = vtanh.f32 %v181_v18 }
 0x1c8   :  { %v242_v19 = vpop.eup %241 }
 0x1c9   :  { %v183_v20 = vadd.f32 1.0, %v242_v19 }
 0x1cb   :  { %v184_v21 = vmul.f32 0.5, %v183_v20 }
 0x1cd   :  { %186 = vst.msk [vmem:[#allocation3] sm:$0x1] %vm185_vm4, %v184_v21 }
 0x1ce   :  { %254 = shalt.err (!%p251_p4)
}
 0x1cf   :  { %s255_s4 = scalar_lea.hbm %s330_s3, 16 }
 0x1d0   :  { %p256_p5 = scmp.ne.s32.totalorder %s330_s3, %s255_s4  ;;  %p259_p6 = scmp.lt.u32.totalorder %s255_s4, %s330_s3 }
 0x1d2   :  { %p261_p7 = pnand %p259_p6, %p256_p5 }
 0x1d4   :  { %264 = shalt.err (!%p261_p7)
}
 0x1d5   :  { %196 = dma.vmem_to_hbm [thread:$0]  %s194_s28, 16, %s330_s3, [#allocation4]  }
 0x1d6   :  { %265 = dma.done.wait [#allocation4], 16  }
 0x1d7   :  { %266 = vsyncadd [#allocation4], 4294967280 }
 0x1d8   :  { %200 = vsyncpa [#allocation4], 1 }

</bundles_post_ra>
